<compile_context>
chip_gen: v7x
topology: tpu7x:2x2x1
jax: 0.10.0
libtpu: 0.0.40
codegen_flags: <defaults>
</compile_context>

<pallas_src>
import jax
import jax.numpy as jnp
from jax.experimental import pallas as pl
from jax.experimental.pallas import tpu as pltpu

IN_DIM = 3 * 28 * 28      # 2352 (divisible by 8 -> valid full sublane dim)
HID = 100
NUM_CLASSES = 10

HID_PAD = 128             # hidden padded to one lane group
OUT_PAD = 128             # lane-dense logits block; sliced to 10 outside


def mlp_kernel(x_ref, w1_ref, b1_ref, w2_ref, b2_ref, w3_ref, b3_ref,
               wc_ref, bc_ref, out_ref):
    # Weights are bf16 (1/255 already folded into w1). MXU accumulates in f32;
    # bias-add / ReLU stay in f32 on the VPU (v5e has no bf16 VPU).
    x = x_ref[...].astype(jnp.bfloat16)
    h = jnp.dot(x, w1_ref[...], preferred_element_type=jnp.float32) + b1_ref[...]
    h = jnp.maximum(h, 0.0)

    h = jnp.dot(h.astype(jnp.bfloat16), w2_ref[...],
                preferred_element_type=jnp.float32) + b2_ref[...]
    h = jnp.maximum(h, 0.0)

    h = jnp.dot(h.astype(jnp.bfloat16), w3_ref[...],
                preferred_element_type=jnp.float32) + b3_ref[...]
    h = jnp.maximum(h, 0.0)

    out_ref[...] = (jnp.dot(h.astype(jnp.bfloat16), wc_ref[...],
                            preferred_element_type=jnp.float32) + bc_ref[...])


def _pad2(a, rows, cols):
    return jnp.pad(a, ((0, rows - a.shape[0]), (0, cols - a.shape[1])))


def prepare_params(params):
    """Fold 1/255 into w1, zero-pad hidden/output dims to 128, cast weights
    to bf16.

    Padding is exact: padded bias entries are 0, ReLU(0)=0, and the padded
    weight rows feeding the next layer are 0, so the logits are unchanged.
    """
    w1, b1, w2, b2, w3, b3, wc, bc = params
    w1 = _pad2(w1 / 255.0, IN_DIM, HID_PAD).astype(jnp.bfloat16)   # (2352,128)
    w2 = _pad2(w2, HID_PAD, HID_PAD).astype(jnp.bfloat16)
    w3 = _pad2(w3, HID_PAD, HID_PAD).astype(jnp.bfloat16)
    wc = _pad2(wc, HID_PAD, OUT_PAD).astype(jnp.bfloat16)
    b1 = _pad2(b1, 1, HID_PAD)
    b2 = _pad2(b2, 1, HID_PAD)
    b3 = _pad2(b3, 1, HID_PAD)
    bc = _pad2(bc, 1, OUT_PAD)
    return (w1, b1, w2, b2, w3, b3, wc, bc)


def _choose_tile_b(batch):
    # <=512 rows: do the whole batch in a single grid step (only 8-alignment
    # padding). Larger batches: 256-row tiles -> full 256x256 MXU rows,
    # bounded padding waste, and the double-buffered f32 x block stays at
    # ~2.4 MiB (well under v7x's 32 MiB scoped VMEM default).
    b8 = max(8, ((batch + 7) // 8) * 8)
    if b8 <= 512:
        return b8
    return 256


def net_forward(x_nchw, params):
    """x_nchw: (B, 3, 28, 28) float32 pixels in [0, 255). Returns (B, 10) f32."""
    B = x_nchw.shape[0]
    x_flat = x_nchw.reshape(B, -1)                       # (B, 2352), no copy

    tile_b = _choose_tile_b(B)
    b_pad = pl.cdiv(B, tile_b) * tile_b
    if b_pad != B:
        x_flat = jnp.pad(x_flat, ((0, b_pad - B), (0, 0)))

    w1, b1, w2, b2, w3, b3, wc, bc = prepare_params(params)

    def resident(shape):
        # Constant block index -> weight/bias stays in VMEM across all steps.
        return pl.BlockSpec(shape, lambda i: (0, 0))

    out = pl.pallas_call(
        mlp_kernel,
        out_shape=jax.ShapeDtypeStruct((b_pad, OUT_PAD), jnp.float32),
        grid=(b_pad // tile_b,),
        in_specs=[
            pl.BlockSpec((tile_b, IN_DIM), lambda i: (i, 0)),   # x: streamed
            resident((IN_DIM, HID_PAD)), resident((1, HID_PAD)),
            resident((HID_PAD, HID_PAD)), resident((1, HID_PAD)),
            resident((HID_PAD, HID_PAD)), resident((1, HID_PAD)),
            resident((HID_PAD, OUT_PAD)), resident((1, OUT_PAD)),
        ],
        out_specs=pl.BlockSpec((tile_b, OUT_PAD), lambda i: (i, 0)),
        compiler_params=pltpu.CompilerParams(
            dimension_semantics=("parallel",)),
    )(x_flat, w1, b1, w2, b2, w3, b3, wc, bc)

    return out[:B, :NUM_CLASSES]


def init_params(key):
    """Deterministic synthetic parameters with PyTorch Linear init, stored
    transposed as (in, out); biases kept 2D (1, out)."""
    ks = jax.random.split(key, 8)

    def lin(kw, kb, fan_in, fan_out):
        bound = 1.0 / jnp.sqrt(fan_in)
        w = jax.random.uniform(kw, (fan_in, fan_out), jnp.float32, -bound, bound)
        b = jax.random.uniform(kb, (1, fan_out), jnp.float32, -bound, bound)
        return w, b

    w1, b1 = lin(ks[0], ks[1], IN_DIM, HID)
    w2, b2 = lin(ks[2], ks[3], HID, HID)
    w3, b3 = lin(ks[4], ks[5], HID, HID)
    wc, bc = lin(ks[6], ks[7], HID, NUM_CLASSES)
    return (w1, b1, w2, b2, w3, b3, wc, bc)


def net_forward_ref_bf16(x_nchw, params):
    """Pure-JAX reference mirroring the kernel's bf16-weight / f32-acc math."""
    w1, b1, w2, b2, w3, b3, wc, bc = prepare_params(params)
    x = x_nchw.reshape(x_nchw.shape[0], -1).astype(jnp.bfloat16)
    h = jnp.maximum(jnp.dot(x, w1, preferred_element_type=jnp.float32) + b1, 0.0)
    h = jnp.maximum(jnp.dot(h.astype(jnp.bfloat16), w2,
                            preferred_element_type=jnp.float32) + b2, 0.0)
    h = jnp.maximum(jnp.dot(h.astype(jnp.bfloat16), w3,
                            preferred_element_type=jnp.float32) + b3, 0.0)
    out = jnp.dot(h.astype(jnp.bfloat16), wc,
                  preferred_element_type=jnp.float32) + bc
    return out[:, :NUM_CLASSES]


def net_forward_ref_f32(x_nchw, params):
    """Exact f32 reference matching the original PyTorch module semantics."""
    w1, b1, w2, b2, w3, b3, wc, bc = params
    x = x_nchw.reshape(x_nchw.shape[0], -1) / 255.0
    h = jnp.maximum(x @ w1 + b1, 0.0)
    h = jnp.maximum(h @ w2 + b2, 0.0)
    h = jnp.maximum(h @ w3 + b3, 0.0)
    return h @ wc + bc


if __name__ == "__main__":
    key = jax.random.PRNGKey(0)
    kx, kp = jax.random.split(key)

    B = 2
    # Pixel-like inputs in [0, 255)
    x = jax.random.uniform(kx, (B, 3, 28, 28), jnp.float32, 0.0, 255.0)
    params = init_params(kp)

    out = jax.block_until_ready(net_forward(x, params))
    assert out.shape == (B, NUM_CLASSES)

    # Tight check against a reference using identical bf16-weight math.
    ref_bf16 = net_forward_ref_bf16(x, params)
    assert jnp.allclose(out, ref_bf16, atol=2e-3, rtol=2e-3)

    # Loose check against the exact f32 module semantics (bf16 weight quant).
    ref_f32 = net_forward_ref_f32(x, params)
    assert jnp.allclose(out, ref_f32, atol=5e-2, rtol=5e-2)

    print("KERNEL_OK")
</pallas_src>

<mosaic_0001>
module attributes {stable_mosaic.version = 11 : i64} {
  func.func @mlp_kernel(%arg0: i32, %arg1: memref<8x2352xf32, #tpu.memory_space<vmem>>, %arg2: memref<2352x128xbf16, #tpu.memory_space<vmem>>, %arg3: memref<1x128xf32, #tpu.memory_space<vmem>>, %arg4: memref<128x128xbf16, #tpu.memory_space<vmem>>, %arg5: memref<1x128xf32, #tpu.memory_space<vmem>>, %arg6: memref<128x128xbf16, #tpu.memory_space<vmem>>, %arg7: memref<1x128xf32, #tpu.memory_space<vmem>>, %arg8: memref<128x128xbf16, #tpu.memory_space<vmem>>, %arg9: memref<1x128xf32, #tpu.memory_space<vmem>>, %arg10: memref<8x128xf32, #tpu.memory_space<vmem>>) attributes {dimension_semantics = [#tpu.dimension_semantics<parallel>], iteration_bounds = array<i64: 1>, scalar_prefetch = 0 : i64, scratch_operands = 0 : i64, tpu.core_type = #tpu.core_type<tc>, window_params = [{transform_indices = @transform_0, window_bounds = array<i64: 8, 2352>}, {pipeline_mode = #tpu.pipeline_mode<synchronous>, transform_indices = @transform_1, window_bounds = array<i64: 2352, 128>}, {pipeline_mode = #tpu.pipeline_mode<synchronous>, transform_indices = @transform_2, window_bounds = array<i64: 1, 128>}, {pipeline_mode = #tpu.pipeline_mode<synchronous>, transform_indices = @transform_3, window_bounds = array<i64: 128, 128>}, {pipeline_mode = #tpu.pipeline_mode<synchronous>, transform_indices = @transform_4, window_bounds = array<i64: 1, 128>}, {pipeline_mode = #tpu.pipeline_mode<synchronous>, transform_indices = @transform_5, window_bounds = array<i64: 128, 128>}, {pipeline_mode = #tpu.pipeline_mode<synchronous>, transform_indices = @transform_6, window_bounds = array<i64: 1, 128>}, {pipeline_mode = #tpu.pipeline_mode<synchronous>, transform_indices = @transform_7, window_bounds = array<i64: 128, 128>}, {pipeline_mode = #tpu.pipeline_mode<synchronous>, transform_indices = @transform_8, window_bounds = array<i64: 1, 128>}, {transform_indices = @transform_9, window_bounds = array<i64: 8, 128>}]} {
    %c0 = arith.constant 0 : index
    %c0_0 = arith.constant 0 : index
    %0 = vector.load %arg1[%c0, %c0_0] : memref<8x2352xf32, #tpu.memory_space<vmem>>, vector<8x2352xf32>
    %1 = arith.truncf %0 : vector<8x2352xf32> to vector<8x2352xbf16>
    %c0_1 = arith.constant 0 : index
    %c0_2 = arith.constant 0 : index
    %2 = vector.load %arg2[%c0_1, %c0_2] : memref<2352x128xbf16, #tpu.memory_space<vmem>>, vector<2352x128xbf16>
    %cst = arith.constant dense<0.000000e+00> : vector<8x128xf32>
    %3 = tpu.matmul %1, %2, %cst {dimension_numbers = #tpu.dot_dimension_numbers<[1], [0], [0], [1], [0, 0, 1, 1], [], []>} : vector<8x2352xbf16>, vector<2352x128xbf16>, vector<8x128xf32> -> vector<8x128xf32>
    %c0_3 = arith.constant 0 : index
    %c0_4 = arith.constant 0 : index
    %4 = vector.load %arg3[%c0_3, %c0_4] : memref<1x128xf32, #tpu.memory_space<vmem>>, vector<1x128xf32>
    %5 = vector.broadcast %4 : vector<1x128xf32> to vector<8x128xf32>
    %6 = arith.addf %3, %5 : vector<8x128xf32>
    %cst_5 = arith.constant 0.000000e+00 : f32
    %7 = vector.broadcast %cst_5 : f32 to vector<8x128xf32>
    %8 = arith.maximumf %6, %7 : vector<8x128xf32>
    %9 = arith.truncf %8 : vector<8x128xf32> to vector<8x128xbf16>
    %c0_6 = arith.constant 0 : index
    %c0_7 = arith.constant 0 : index
    %10 = vector.load %arg4[%c0_6, %c0_7] : memref<128x128xbf16, #tpu.memory_space<vmem>>, vector<128x128xbf16>
    %cst_8 = arith.constant dense<0.000000e+00> : vector<8x128xf32>
    %11 = tpu.matmul %9, %10, %cst_8 {dimension_numbers = #tpu.dot_dimension_numbers<[1], [0], [0], [1], [0, 0, 1, 1], [], []>} : vector<8x128xbf16>, vector<128x128xbf16>, vector<8x128xf32> -> vector<8x128xf32>
    %c0_9 = arith.constant 0 : index
    %c0_10 = arith.constant 0 : index
    %12 = vector.load %arg5[%c0_9, %c0_10] : memref<1x128xf32, #tpu.memory_space<vmem>>, vector<1x128xf32>
    %13 = vector.broadcast %12 : vector<1x128xf32> to vector<8x128xf32>
    %14 = arith.addf %11, %13 : vector<8x128xf32>
    %cst_11 = arith.constant 0.000000e+00 : f32
    %15 = vector.broadcast %cst_11 : f32 to vector<8x128xf32>
    %16 = arith.maximumf %14, %15 : vector<8x128xf32>
    %17 = arith.truncf %16 : vector<8x128xf32> to vector<8x128xbf16>
    %c0_12 = arith.constant 0 : index
    %c0_13 = arith.constant 0 : index
    %18 = vector.load %arg6[%c0_12, %c0_13] : memref<128x128xbf16, #tpu.memory_space<vmem>>, vector<128x128xbf16>
    %cst_14 = arith.constant dense<0.000000e+00> : vector<8x128xf32>
    %19 = tpu.matmul %17, %18, %cst_14 {dimension_numbers = #tpu.dot_dimension_numbers<[1], [0], [0], [1], [0, 0, 1, 1], [], []>} : vector<8x128xbf16>, vector<128x128xbf16>, vector<8x128xf32> -> vector<8x128xf32>
    %c0_15 = arith.constant 0 : index
    %c0_16 = arith.constant 0 : index
    %20 = vector.load %arg7[%c0_15, %c0_16] : memref<1x128xf32, #tpu.memory_space<vmem>>, vector<1x128xf32>
    %21 = vector.broadcast %20 : vector<1x128xf32> to vector<8x128xf32>
    %22 = arith.addf %19, %21 : vector<8x128xf32>
    %cst_17 = arith.constant 0.000000e+00 : f32
    %23 = vector.broadcast %cst_17 : f32 to vector<8x128xf32>
    %24 = arith.maximumf %22, %23 : vector<8x128xf32>
    %25 = arith.truncf %24 : vector<8x128xf32> to vector<8x128xbf16>
    %c0_18 = arith.constant 0 : index
    %c0_19 = arith.constant 0 : index
    %26 = vector.load %arg8[%c0_18, %c0_19] : memref<128x128xbf16, #tpu.memory_space<vmem>>, vector<128x128xbf16>
    %cst_20 = arith.constant dense<0.000000e+00> : vector<8x128xf32>
    %27 = tpu.matmul %25, %26, %cst_20 {dimension_numbers = #tpu.dot_dimension_numbers<[1], [0], [0], [1], [0, 0, 1, 1], [], []>} : vector<8x128xbf16>, vector<128x128xbf16>, vector<8x128xf32> -> vector<8x128xf32>
    %c0_21 = arith.constant 0 : index
    %c0_22 = arith.constant 0 : index
    %28 = vector.load %arg9[%c0_21, %c0_22] : memref<1x128xf32, #tpu.memory_space<vmem>>, vector<1x128xf32>
    %29 = vector.broadcast %28 : vector<1x128xf32> to vector<8x128xf32>
    %30 = arith.addf %27, %29 : vector<8x128xf32>
    %c0_23 = arith.constant 0 : index
    %c0_24 = arith.constant 0 : index
    %31 = vector.load %arg10[%c0_23, %c0_24] : memref<8x128xf32, #tpu.memory_space<vmem>>, vector<8x128xf32>
    tpu.vector_store %arg10[%c0_23, %c0_24], %30 {strides = array<i32>} : memref<8x128xf32, #tpu.memory_space<vmem>>, vector<8x128xf32>,
    return
  }
  func.func @transform_0(%arg0: i32) -> (i32, i32) {
    %c0_i32 = arith.constant 0 : i32
    %c0_i32_0 = arith.constant 0 : i32
    return %arg0, %c0_i32 : i32, i32
  }
  func.func @transform_1(%arg0: i32) -> (i32, i32) {
    %c0_i32 = arith.constant 0 : i32
    %c0_i32_0 = arith.constant 0 : i32
    %c0_i32_1 = arith.constant 0 : i32
    return %c0_i32, %c0_i32_0 : i32, i32
  }
  func.func @transform_2(%arg0: i32) -> (i32, i32) {
    %c0_i32 = arith.constant 0 : i32
    %c0_i32_0 = arith.constant 0 : i32
    %c0_i32_1 = arith.constant 0 : i32
    return %c0_i32, %c0_i32_0 : i32, i32
  }
  func.func @transform_3(%arg0: i32) -> (i32, i32) {
    %c0_i32 = arith.constant 0 : i32
    %c0_i32_0 = arith.constant 0 : i32
    %c0_i32_1 = arith.constant 0 : i32
    return %c0_i32, %c0_i32_0 : i32, i32
  }
  func.func @transform_4(%arg0: i32) -> (i32, i32) {
    %c0_i32 = arith.constant 0 : i32
    %c0_i32_0 = arith.constant 0 : i32
    %c0_i32_1 = arith.constant 0 : i32
    return %c0_i32, %c0_i32_0 : i32, i32
  }
  func.func @transform_5(%arg0: i32) -> (i32, i32) {
    %c0_i32 = arith.constant 0 : i32
    %c0_i32_0 = arith.constant 0 : i32
    %c0_i32_1 = arith.constant 0 : i32
    return %c0_i32, %c0_i32_0 : i32, i32
  }
  func.func @transform_6(%arg0: i32) -> (i32, i32) {
    %c0_i32 = arith.constant 0 : i32
    %c0_i32_0 = arith.constant 0 : i32
    %c0_i32_1 = arith.constant 0 : i32
    return %c0_i32, %c0_i32_0 : i32, i32
  }
  func.func @transform_7(%arg0: i32) -> (i32, i32) {
    %c0_i32 = arith.constant 0 : i32
    %c0_i32_0 = arith.constant 0 : i32
    %c0_i32_1 = arith.constant 0 : i32
    return %c0_i32, %c0_i32_0 : i32, i32
  }
  func.func @transform_8(%arg0: i32) -> (i32, i32) {
    %c0_i32 = arith.constant 0 : i32
    %c0_i32_0 = arith.constant 0 : i32
    %c0_i32_1 = arith.constant 0 : i32
    return %c0_i32, %c0_i32_0 : i32, i32
  }
  func.func @transform_9(%arg0: i32) -> (i32, i32) {
    %c0_i32 = arith.constant 0 : i32
    %c0_i32_0 = arith.constant 0 : i32
    return %arg0, %c0_i32 : i32, i32
  }
}

</mosaic_0001>

<bundles_post_ra>
// kernel: tpu_custom_call.1
= control target key start
LH: loop header
LB: loop body
LE: loop exit
PB: predicated region body
PF: predicated region fallthrough
CT: control target
= control target key end

     0   :  { %14 = vsyncpa [#allocation3], 0  ;;  %s3069_s0 = inlined_call_operand.hbm [shape: f32[8,2352], index: 0, kind: input, shape index: {}]   ;;  %s3070_s1 = inlined_call_operand.hbm [shape: bf16[2352,128], index: 1, kind: input, shape index: {}]   ;;  %s3071_s2 = inlined_call_operand.vmem [shape: f32[1,128], index: 2, kind: input, shape index: {}]   ;;  %s3072_s3 = inlined_call_operand.hbm [shape: bf16[128,128], index: 3, kind: input, shape index: {}]   ;;  %s3073_s4 = inlined_call_operand.vmem [shape: f32[1,128], index: 4, kind: input, shape index: {}]   ;;  %s3074_s5 = inlined_call_operand.hbm [shape: bf16[128,128], index: 5, kind: input, shape index: {}]   ;;  %s3075_s6 = inlined_call_operand.vmem [shape: f32[1,128], index: 6, kind: input, shape index: {}]   ;;  %s3076_s7 = inlined_call_operand.hbm [shape: bf16[128,128], index: 7, kind: input, shape index: {}]   ;;  %s3077_s8 = inlined_call_operand.vmem [shape: f32[1,128], index: 8, kind: input, shape index: {}]   ;;  %s3078_s9 = inlined_call_operand.hbm [shape: f32[8,128], index: 9, kind: output, shape index: {}]  }
   0x1   :  { %15 = vsyncpa [#allocation6], 0 }
   0x2   :  { %16 = vsyncpa [#allocation9], 0 }
   0x3   :  { %17 = vsyncpa [#allocation4], 0  ;;  %s2878_s30 = smov [#allocation5]   ;;  %s2738_s13 = scalar_lea.hbm %s3070_s1, 18816 }
   0x4   :  { %s33_s10 = sshll.u32 %s2878_s30, 4  ;;  %p2739_p0 = scmp.ne.s32.totalorder %s3070_s1, %s2738_s13  ;;  %s34_s10 = int_to_ptr.vmem [resolvable:$true] %s33_s10 }
   0x5   :  { %p2742_p1 = scmp.lt.u32.totalorder %s2738_s13, %s3070_s1 }
   0x7   :  { %p2744_p2 = pnand %p2742_p1, %p2739_p0 }
   0x9   :  { %2747 = shalt.err (!%p2744_p2)
}
   0xa   :  { %s2748_s18 = scalar_lea.vmem %s34_s10, 18816  ;;  %p2753_p4 = scmp.lt.s32.totalorder %s34_s10, %s34_s10 }
   0xb   :  { %p2749_p3 = scmp.ne.s32.totalorder %s34_s10, %s2748_s18  ;;  %p2754_p5 = scmp.lt.s32.totalorder %s2748_s18, %s2748_s18 }
   0xd   :  { %p2755_p6 = por %p2754_p5, %p2753_p4 }
   0xf   :  { %p2756_p7 = pnand %p2755_p6, %p2749_p3 }
  0x11   :  { %2759 = shalt.err (!%p2756_p7)
}
  0x12   :  { %s2879_s19 = smov 64   ;;  %s2880_s20 = smov 4  }
  0x13   :  { %39 = dma.hbm_to_vmem [thread:$0]  %s3070_s1, 18816, %s34_s10, [#allocation6], %s2879_s19, %s2879_s19, %s2880_s20  }
  0x14   :  { %s2881_s23 = smov [#allocation8]   ;;  %s2882_s25 = smov [#allocation2]  }
  0x15   :  { %s61_s24 = sshll.u32 %s2881_s23, 4  ;;  %s24_s26 = sshll.u32 %s2882_s25, 4  ;;  %s62_s24 = int_to_ptr.vmem [resolvable:$true] %s61_s24  ;;  %s25_s26 = int_to_ptr.vmem [resolvable:$true] %s24_s26 }
  0x16   :  { %s2760_s29 = scalar_lea.hbm %s3074_s5, 1024 }
  0x17   :  { %p2761_p8 = scmp.ne.s32.totalorder %s3074_s5, %s2760_s29  ;;  %p2764_p9 = scmp.lt.u32.totalorder %s2760_s29, %s3074_s5 }
  0x19   :  { %p2766_p10 = pnand %p2764_p9, %p2761_p8 }
  0x1b   :  { %2769 = shalt.err (!%p2766_p10)
}
  0x1c   :  { %s2770_s1 = scalar_lea.vmem %s62_s24, 1024  ;;  %p2775_p12 = scmp.lt.s32.totalorder %s62_s24, %s62_s24 }
  0x1d   :  { %p2771_p11 = scmp.ne.s32.totalorder %s62_s24, %s2770_s1  ;;  %p2776_p13 = scmp.lt.s32.totalorder %s2770_s1, %s2770_s1 }
  0x1f   :  { %p2777_p0 = por %p2776_p13, %p2775_p12 }
  0x21   :  { %p2778_p1 = pnand %p2777_p0, %p2771_p11 }
  0x23   :  { %2781 = shalt.err (!%p2778_p1)
}
  0x24   :  { %67 = dma.hbm_to_vmem [thread:$0]  %s3074_s5, 1024, %s62_s24, [#allocation9], %s2879_s19, %s2879_s19, %s2880_s20  }
  0x25   :  { %s2782_s17 = scalar_lea.hbm %s3069_s0, 2432 }
  0x26   :  { %p2783_p2 = scmp.ne.s32.totalorder %s3069_s0, %s2782_s17  ;;  %p2786_p3 = scmp.lt.u32.totalorder %s2782_s17, %s3069_s0 }
  0x28   :  { %p2788_p4 = pnand %p2786_p3, %p2783_p2 }
  0x2a   :  { %2791 = shalt.err (!%p2788_p4)
}
  0x2b   :  { %s2792_s25 = scalar_lea.vmem %s25_s26, 2432  ;;  %p2797_p6 = scmp.lt.s32.totalorder %s25_s26, %s25_s26 }
  0x2c   :  { %p2793_p5 = scmp.ne.s32.totalorder %s25_s26, %s2792_s25  ;;  %p2798_p7 = scmp.lt.s32.totalorder %s2792_s25, %s2792_s25 }
  0x2e   :  { %p2799_p8 = por %p2798_p7, %p2797_p6 }
  0x30   :  { %p2800_p9 = pnand %p2799_p8, %p2793_p5 }
  0x32   :  { %2803 = shalt.err (!%p2800_p9)
}
  0x33   :  { %27 = dma.hbm_to_vmem [thread:$0]  %s3069_s0, 2432, %s25_s26, [#allocation3]  }
  0x34   :  { %s2883_s27 = smov [#allocation7]   ;;  %s2884_s29 = smov [#allocation10]  }
  0x35   :  { %s47_s28 = sshll.u32 %s2883_s27, 4  ;;  %s75_s30 = sshll.u32 %s2884_s29, 4  ;;  %s48_s28 = int_to_ptr.vmem [resolvable:$true] %s47_s28  ;;  %s76_s30 = int_to_ptr.vmem [resolvable:$true] %s75_s30 }
  0x36   :  { %s2804_s13 = scalar_lea.hbm %s3072_s3, 1024 }
  0x37   :  { %p2805_p10 = scmp.ne.s32.totalorder %s3072_s3, %s2804_s13  ;;  %p2808_p11 = scmp.lt.u32.totalorder %s2804_s13, %s3072_s3 }
  0x39   :  { %p2810_p12 = pnand %p2808_p11, %p2805_p10 }
  0x3b   :  { %2813 = shalt.err (!%p2810_p12)
}
  0x3c   :  { %s2814_s0 = scalar_lea.vmem %s48_s28, 1024  ;;  %p2819_p0 = scmp.lt.s32.totalorder %s48_s28, %s48_s28 }
  0x3d   :  { %p2815_p13 = scmp.ne.s32.totalorder %s48_s28, %s2814_s0  ;;  %p2820_p1 = scmp.lt.s32.totalorder %s2814_s0, %s2814_s0 }
  0x3f   :  { %p2821_p2 = por %p2820_p1, %p2819_p0 }
  0x41   :  { %p2822_p3 = pnand %p2821_p2, %p2815_p13 }
  0x43   :  { %2825 = shalt.err (!%p2822_p3)
}
  0x44   :  { %53 = dma.hbm_to_vmem [thread:$0]  %s3072_s3, 1024, %s48_s28, [#allocation6], %s2879_s19, %s2879_s19, %s2880_s20  }
  0x45   :  { %s2826_s21 = scalar_lea.hbm %s3076_s7, 1024 }
  0x46   :  { %p2827_p4 = scmp.ne.s32.totalorder %s3076_s7, %s2826_s21  ;;  %p2830_p5 = scmp.lt.u32.totalorder %s2826_s21, %s3076_s7 }
  0x48   :  { %p2832_p6 = pnand %p2830_p5, %p2827_p4 }
  0x4a   :  { %2835 = shalt.err (!%p2832_p6)
}
  0x4b   :  { %s2836_s24 = scalar_lea.vmem %s76_s30, 1024  ;;  %p2841_p8 = scmp.lt.s32.totalorder %s76_s30, %s76_s30 }
  0x4c   :  { %p2837_p7 = scmp.ne.s32.totalorder %s76_s30, %s2836_s24  ;;  %p2842_p9 = scmp.lt.s32.totalorder %s2836_s24, %s2836_s24 }
  0x4e   :  { %p2843_p10 = por %p2842_p9, %p2841_p8 }
  0x50   :  { %p2844_p11 = pnand %p2843_p10, %p2837_p7 }
  0x52   :  { %2847 = shalt.err (!%p2844_p11)
}
  0x53   :  { %81 = dma.hbm_to_vmem [thread:$0]  %s3076_s7, 1024, %s76_s30, [#allocation9], %s2879_s19, %s2879_s19, %s2880_s20  }
  0x54   :  { %2870 = dma.done.wait [#allocation3], 2432  }
  0x55   :  { %2871 = vsyncadd [#allocation3], 4294964864 }
  0x56   :  { %2872 = dma.done.wait [#allocation6], 19840  }
  0x57   :  { %2873 = vsyncadd [#allocation6], 4294947456 }
  0x58   :  { %2874 = dma.done.wait [#allocation9], 2048  }
  0x59   :  { %2875 = vsyncadd [#allocation9], 4294965248  ;;  %v2567_v0 = vld [vmem:[#allocation5 + $0x40] sm:$0xff]   ;;  %v2571_v4 = vld [vmem:[#allocation5 + $0x48] sm:$0xff]   ;;  %vm2886_vm0 = vmmov 0   ;;  %vm1321_vm1 = vcmask 392192  }
  0x5a   :  { %v2568_v1 = vld [vmem:[#allocation5] sm:$0xff]   ;;  %2258 = vmatprep.subr.bf16.mxu0 %v2567_v0  ;;  %v2572_v5 = vld [vmem:[#allocation5 + $0x8] sm:$0xff]   ;;  %v2575_v8 = vld [vmem:[#allocation5 + $0x50] sm:$0xff]   ;;  %s2887_s11 = smov [#allocation11]  }
  0x5b   :  { %v2569_v2 = vld [vmem:[#allocation5 + $0xc0] sm:$0xff]   ;;  %2259 = vmatpush3.bf16.msra.mxu0 %v2568_v1  ;;  %v2573_v6 = vld [vmem:[#allocation5 + $0xc8] sm:$0xff]   ;;  %v2576_v9 = vld [vmem:[#allocation5 + $0x10] sm:$0xff]   ;;  %s2071_s12 = sshll.u32 %s2887_s11, 4  ;;  %s2072_s12 = int_to_ptr.vmem [resolvable:$true] %s2071_s12 }
  0x5c   :  { %v2570_v3 = vld [vmem:[#allocation5 + $0x80] sm:$0xff]   ;;  %2280 = vmatprep.subr.bf16.mxu1 %v2569_v2  ;;  %2260 = vmatprep.subr.bf16.mxu0 %v2571_v4  ;;  %v2574_v7 = vld [vmem:[#allocation5 + $0x88] sm:$0xff]   ;;  %v2577_v10 = vld [vmem:[#allocation5 + $0xd0] sm:$0xff]   ;;  %p2853_p13 = scmp.lt.s32.totalorder %s2072_s12, %s2072_s12 }
  0x5d   :  { %2281 = vmatpush3.bf16.msra.mxu1 %v2570_v3  ;;  %v2578_v11 = vld [vmem:[#allocation5 + $0x90] sm:$0xff]   ;;  %v2579_v12 = vld [vmem:[#allocation5 + $0x58] sm:$0xff]   ;;  %v2583_v16 = vld [vmem:[#allocation5 + $0x60] sm:$0xff]  }
  0x5e   :  { %2282 = vmatprep.subr.bf16.mxu1 %v2573_v6  ;;  %v2580_v13 = vld [vmem:[#allocation5 + $0x18] sm:$0xff]   ;;  %v2584_v17 = vld [vmem:[#allocation5 + $0x20] sm:$0xff]   ;;  %v2587_v20 = vld [vmem:[#allocation5 + $0x68] sm:$0xff]  }
  0x5f   :  { %2261 = vmatpush3.bf16.msra.mxu0 %v2572_v5  ;;  %v2581_v14 = vld [vmem:[#allocation5 + $0xd8] sm:$0xff]   ;;  %v2585_v18 = vld [vmem:[#allocation5 + $0xe0] sm:$0xff]   ;;  %v2588_v21 = vld [vmem:[#allocation5 + $0x28] sm:$0xff]  }
  0x60   :  { %2262 = vmatprep.subr.bf16.mxu0 %v2575_v8  ;;  %v2582_v15 = vld [vmem:[#allocation5 + $0x98] sm:$0xff]   ;;  %v2586_v19 = vld [vmem:[#allocation5 + $0xa0] sm:$0xff]   ;;  %v2589_v22 = vld [vmem:[#allocation5 + $0xe8] sm:$0xff]  }
  0x61   :  { %2283 = vmatpush3.bf16.msra.mxu1 %v2574_v7  ;;  %v2590_v23 = vld [vmem:[#allocation5 + $0xa8] sm:$0xff]   ;;  %v2591_v24 = vld [vmem:[#allocation5 + $0x70] sm:$0xff]   ;;  %v2595_v28 = vld [vmem:[#allocation5 + $0x78] sm:$0xff]  }
  0x62   :  { %2284 = vmatprep.subr.bf16.mxu1 %v2577_v10  ;;  %v2592_v25 = vld [vmem:[#allocation5 + $0x30] sm:$0xff]   ;;  %v2596_v29 = vld [vmem:[#allocation5 + $0x38] sm:$0xff]   ;;  %v100_v34 = vld [vmem:[#allocation2] sm:$0xff] }
  0x63   :  { %2263 = vmatpush3.bf16.msra.mxu0 %v2576_v9  ;;  %v2593_v26 = vld [vmem:[#allocation5 + $0xf0] sm:$0xff]   ;;  %v2597_v30 = vld [vmem:[#allocation5 + $0xf8] sm:$0xff]   ;;  %v119_v35 = vpack.c.bf16 %v100_v34, %v100_v34  ;;  %v2599_v36 = vld [vmem:[#allocation5 + $0x140] sm:$0xff]  }
  0x64   :  { %2264 = vmatprep.subr.bf16.mxu0 %v2579_v12  ;;  %v2594_v27 = vld [vmem:[#allocation5 + $0xb0] sm:$0xff]   ;;  %v2598_v33 = vld [vmem:[#allocation5 + $0xb8] sm:$0xff]   ;;  %v103_v37 = vld [vmem:[#allocation2 + $0x18] sm:$0xff] }
  0x65   :  { %2285 = vmatpush3.bf16.msra.mxu1 %v2578_v11  ;;  %v101_v31 = vld [vmem:[#allocation2 + $0x8] sm:$0xff]  ;;  %v122_v38 = vpack.c.bf16 %v103_v37, %v103_v37  ;;  %v2600_v39 = vld [vmem:[#allocation5 + $0x100] sm:$0xff]   ;;  %v102_v40 = vld [vmem:[#allocation2 + $0x10] sm:$0xff] }
  0x66   :  { %2286 = vmatprep.subr.bf16.mxu1 %v2581_v14  ;;  %v120_v32 = vpack.c.bf16 %v101_v31, %v101_v31  ;;  %v121_v41 = vpack.c.bf16 %v102_v40, %v102_v40  ;;  %v2601_v42 = vld [vmem:[#allocation5 + $0x1c0] sm:$0xff]   ;;  %v2603_v44 = vld [vmem:[#allocation5 + $0x148] sm:$0xff]   ;;  %v2607_v48 = vld [vmem:[#allocation5 + $0x150] sm:$0xff]  }
  0x67   :  { %2265 = vmatpush3.bf16.msra.mxu0 %v2580_v13  ;;  %1397 = vmatprep.mubr.bf16.mxu1 %v122_v38  ;;  %v2602_v43 = vld [vmem:[#allocation5 + $0x180] sm:$0xff]   ;;  %v2604_v45 = vld [vmem:[#allocation5 + $0x108] sm:$0xff]   ;;  %v2608_v49 = vld [vmem:[#allocation5 + $0x110] sm:$0xff]  }
  0x68   :  { %2266 = vmatprep.subr.bf16.mxu0 %v2583_v16  ;;  %1357 = vmatprep.mubr.bf16.mxu0 %v120_v32  ;;  %v2605_v46 = vld [vmem:[#allocation5 + $0x1c8] sm:$0xff]   ;;  %v2609_v50 = vld [vmem:[#allocation5 + $0x1d0] sm:$0xff]   ;;  %v2611_v52 = vld [vmem:[#allocation5 + $0x158] sm:$0xff]  }
  0x69   :  { %2287 = vmatpush3.bf16.msra.mxu1 %v2582_v15  ;;  %v2606_v47 = vld [vmem:[#allocation5 + $0x188] sm:$0xff]   ;;  %v2610_v51 = vld [vmem:[#allocation5 + $0x190] sm:$0xff]   ;;  %v2612_v53 = vld [vmem:[#allocation5 + $0x118] sm:$0xff]  }
  0x6a   :  { %2288 = vmatprep.subr.bf16.mxu1 %v2585_v18  ;;  %v2613_v54 = vld [vmem:[#allocation5 + $0x1d8] sm:$0xff]   ;;  %v2615_v56 = vld [vmem:[#allocation5 + $0x160] sm:$0xff]   ;;  %v2619_v60 = vld [vmem:[#allocation5 + $0x168] sm:$0xff]  }
  0x6b   :  { %2267 = vmatpush3.bf16.msra.mxu0 %v2584_v17  ;;  %v2614_v55 = vld [vmem:[#allocation5 + $0x198] sm:$0xff]   ;;  %v2616_v57 = vld [vmem:[#allocation5 + $0x120] sm:$0xff]   ;;  %v2620_v61 = vld [vmem:[#allocation5 + $0x128] sm:$0xff]  }
  0x6c   :  { %2268 = vmatprep.subr.bf16.mxu0 %v2587_v20  ;;  %v2617_v58 = vld [vmem:[#allocation5 + $0x1e0] sm:$0xff]   ;;  %v2621_v62 = vld [vmem:[#allocation5 + $0x1e8] sm:$0xff]   ;;  %v2623_v0 = vld [vmem:[#allocation5 + $0x170] sm:$0xff]  }
  0x6d   :  { %2289 = vmatpush3.bf16.msra.mxu1 %v2586_v19  ;;  %v2618_v59 = vld [vmem:[#allocation5 + $0x1a0] sm:$0xff]   ;;  %v2622_v63 = vld [vmem:[#allocation5 + $0x1a8] sm:$0xff]   ;;  %v2624_v1 = vld [vmem:[#allocation5 + $0x130] sm:$0xff]  }
  0x6e   :  { %2290 = vmatprep.subr.bf16.mxu1 %v2589_v22  ;;  %v2625_v2 = vld [vmem:[#allocation5 + $0x1f0] sm:$0xff]   ;;  %v2627_v4 = vld [vmem:[#allocation5 + $0x178] sm:$0xff]   ;;  %v104_v10 = vld [vmem:[#allocation2 + $0x20] sm:$0xff] }
  0x6f   :  { %2269 = vmatpush3.bf16.msra.mxu0 %v2588_v21  ;;  %v2626_v3 = vld [vmem:[#allocation5 + $0x1b0] sm:$0xff]   ;;  %v2628_v5 = vld [vmem:[#allocation5 + $0x138] sm:$0xff]   ;;  %v123_v11 = vpack.c.bf16 %v104_v10, %v104_v10  ;;  %v2631_v12 = vld [vmem:[#allocation5 + $0x240] sm:$0xff]  }
  0x70   :  { %2270 = vmatprep.subr.bf16.mxu0 %v2591_v24  ;;  %v2629_v6 = vld [vmem:[#allocation5 + $0x1f8] sm:$0xff]   ;;  %v105_v7 = vld [vmem:[#allocation2 + $0x28] sm:$0xff]  ;;  %v107_v13 = vld [vmem:[#allocation2 + $0x38] sm:$0xff] }
  0x71   :  { %2291 = vmatpush3.bf16.msra.mxu1 %v2590_v23  ;;  %v124_v8 = vpack.c.bf16 %v105_v7, %v105_v7  ;;  %v2630_v9 = vld [vmem:[#allocation5 + $0x1b8] sm:$0xff]   ;;  %v126_v14 = vpack.c.bf16 %v107_v13, %v107_v13  ;;  %v2632_v15 = vld [vmem:[#allocation5 + $0x200] sm:$0xff]   ;;  %v2635_v20 = vld [vmem:[#allocation5 + $0x248] sm:$0xff]  }
  0x72   :  { %2292 = vmatprep.subr.bf16.mxu1 %v2593_v26  ;;  %v106_v16 = vld [vmem:[#allocation2 + $0x30] sm:$0xff]  ;;  %v2633_v18 = vld [vmem:[#allocation5 + $0x2c0] sm:$0xff]   ;;  %v2636_v21 = vld [vmem:[#allocation5 + $0x208] sm:$0xff]  }
  0x73   :  { %2271 = vmatpush3.bf16.msra.mxu0 %v2592_v25  ;;  %v125_v17 = vpack.c.bf16 %v106_v16, %v106_v16  ;;  %v2634_v19 = vld [vmem:[#allocation5 + $0x280] sm:$0xff]   ;;  %v2637_v22 = vld [vmem:[#allocation5 + $0x2c8] sm:$0xff]   ;;  %v2639_v24 = vld [vmem:[#allocation5 + $0x250] sm:$0xff]  }
  0x74   :  { %2272 = vmatprep.subr.bf16.mxu0 %v2595_v28  ;;  %v2638_v23 = vld [vmem:[#allocation5 + $0x288] sm:$0xff]   ;;  %v2640_v25 = vld [vmem:[#allocation5 + $0x210] sm:$0xff]   ;;  %v2643_v28 = vld [vmem:[#allocation5 + $0x258] sm:$0xff]  }
  0x75   :  { %2293 = vmatpush3.bf16.msra.mxu1 %v2594_v27  ;;  %v2641_v26 = vld [vmem:[#allocation5 + $0x2d0] sm:$0xff]   ;;  %v2646_v31 = vld [vmem:[#allocation5 + $0x298] sm:$0xff]   ;;  %v2647_v32 = vld [vmem:[#allocation5 + $0x260] sm:$0xff]  }
  0x76   :  { %2294 = vmatprep.subr.bf16.mxu1 %v2597_v30  ;;  %v2642_v27 = vld [vmem:[#allocation5 + $0x290] sm:$0xff]   ;;  %v2645_v30 = vld [vmem:[#allocation5 + $0x2d8] sm:$0xff]   ;;  %v2649_v34 = vld [vmem:[#allocation5 + $0x2e0] sm:$0xff]  }
  0x77   :  { %2273 = vmatpush3.bf16.msra.mxu0 %v2596_v29  ;;  %v2644_v29 = vld [vmem:[#allocation5 + $0x218] sm:$0xff]   ;;  %v2652_v37 = vld [vmem:[#allocation5 + $0x228] sm:$0xff]   ;;  %v2655_v40 = vld [vmem:[#allocation5 + $0x270] sm:$0xff]  }
  0x78   :  { %2302 = vmatprep.subr.bf16.mxu0 %v2599_v36  ;;  %v2651_v36 = vld [vmem:[#allocation5 + $0x268] sm:$0xff]   ;;  %v2678_v7 = vld [vmem:[#allocation5 + $0x398] sm:$0xff]   ;;  %v2681_v10 = vld [vmem:[#allocation5 + $0x3e0] sm:$0xff]  }
  0x79   :  { %2295 = vmatpush3.bf16.msra.mxu1 %v2598_v33  ;;  %v2648_v33 = vld [vmem:[#allocation5 + $0x220] sm:$0xff]   ;;  %v2653_v38 = vld [vmem:[#allocation5 + $0x2e8] sm:$0xff]   ;;  %v2687_v16 = vld [vmem:[#allocation5 + $0x370] sm:$0xff]  }
  0x7a   :  { %1358 = vmatmul.mubr.bf16.vlgmr.msra.gmra.mrb[0].mxu0 %v119_v35  ;;  %2324 = vmatprep.subr.bf16.mxu1 %v2601_v42  ;;  %v2650_v35 = vld [vmem:[#allocation5 + $0x2a0] sm:$0xff]   ;;  %v2657_v42 = vld [vmem:[#allocation5 + $0x2f0] sm:$0xff]   ;;  %v2684_v13 = vld [vmem:[#allocation5 + $0x328] sm:$0xff]  }
  0x7b   :  { %2303 = vmatpush3.bf16.msra.mxu0 %v2600_v39  ;;  %1437 = vmatprep.mubr.bf16.mxu0 %v124_v8  ;;  %v2654_v39 = vld [vmem:[#allocation5 + $0x2a8] sm:$0xff]   ;;  %v2679_v8 = vld [vmem:[#allocation5 + $0x360] sm:$0xff]  }
  0x7c   :  { %1398 = vmatmul.mubr.bf16.vlgmr.msra.gmra.mrb[0].mxu1 %v121_v41  ;;  %2304 = vmatprep.subr.bf16.mxu0 %v2603_v44  ;;  %v2656_v41 = vld [vmem:[#allocation5 + $0x230] sm:$0xff]   ;;  %v2659_v44 = vld [vmem:[#allocation5 + $0x278] sm:$0xff]  }
  0x7d   :  { %2325 = vmatpush3.bf16.msra.mxu1 %v2602_v43  ;;  %1477 = vmatprep.mubr.bf16.mxu1 %v126_v14  ;;  %v2658_v43 = vld [vmem:[#allocation5 + $0x2b0] sm:$0xff]   ;;  %v2685_v14 = vld [vmem:[#allocation5 + $0x3e8] sm:$0xff]  }
  0x7e   :  { %2326 = vmatprep.subr.bf16.mxu1 %v2605_v46  ;;  %v2661_v46 = vld [vmem:[#allocation5 + $0x2f8] sm:$0xff]  }
  0x7f   :  { %2305 = vmatpush3.bf16.msra.mxu0 %v2604_v45  ;;  %v2660_v45 = vld [vmem:[#allocation5 + $0x238] sm:$0xff]  }
  0x80   :  { %2306 = vmatprep.subr.bf16.mxu0 %v2607_v48 }
  0x81   :  { %2327 = vmatpush3.bf16.msra.mxu1 %v2606_v47  ;;  %v109_v47 = vld [vmem:[#allocation2 + $0x48] sm:$0xff] }
  0x82   :  { %2328 = vmatprep.subr.bf16.mxu1 %v2609_v50  ;;  %v128_v48 = vpack.c.bf16 %v109_v47, %v109_v47  ;;  %v108_v50 = vld [vmem:[#allocation2 + $0x40] sm:$0xff] }
  0x83   :  { %2307 = vmatpush3.bf16.msra.mxu0 %v2608_v49  ;;  %v2662_v49 = vld [vmem:[#allocation5 + $0x2b8] sm:$0xff]   ;;  %v2706_v47 = vld [vmem:[#allocation5 + $0x428] sm:$0xff]  }
  0x84   :  { %2308 = vmatprep.subr.bf16.mxu0 %v2611_v52  ;;  %v2663_v52 = vld [vmem:[#allocation5 + $0x340] sm:$0xff]  }
  0x85   :  { %2329 = vmatpush3.bf16.msra.mxu1 %v2610_v51  ;;  %v127_v51 = vpack.c.bf16 %v108_v50, %v108_v50  ;;  %v2708_v50 = vld [vmem:[#allocation5 + $0x470] sm:$0xff]  }
  0x86   :  { %2330 = vmatprep.subr.bf16.mxu1 %v2613_v54 }
  0x87   :  { %2309 = vmatpush3.bf16.msra.mxu0 %v2612_v53  ;;  %v111_v53 = vld [vmem:[#allocation2 + $0x58] sm:$0xff] }
  0x88   :  { %2310 = vmatprep.subr.bf16.mxu0 %v2615_v56  ;;  %v130_v54 = vpack.c.bf16 %v111_v53, %v111_v53  ;;  %v110_v56 = vld [vmem:[#allocation2 + $0x50] sm:$0xff] }
  0x89   :  { %2331 = vmatpush3.bf16.msra.mxu1 %v2614_v55  ;;  %v2664_v55 = vld [vmem:[#allocation5 + $0x300] sm:$0xff]   ;;  %v2711_v53 = vld [vmem:[#allocation5 + $0x478] sm:$0xff]  }
  0x8a   :  { %2332 = vmatprep.subr.bf16.mxu1 %v2617_v58  ;;  %v2665_v58 = vld [vmem:[#allocation5 + $0x3c0] sm:$0xff]  }
  0x8b   :  { %2311 = vmatpush3.bf16.msra.mxu0 %v2616_v57  ;;  %v129_v57 = vpack.c.bf16 %v110_v56, %v110_v56  ;;  %v116_v56 = vld [vmem:[#allocation2 + $0x80] sm:$0xff] }
  0x8c   :  { %2312 = vmatprep.subr.bf16.mxu0 %v2619_v60  ;;  %v2667_v60 = vld [vmem:[#allocation5 + $0x348] sm:$0xff]  }
  0x8d   :  { %2333 = vmatpush3.bf16.msra.mxu1 %v2618_v59  ;;  %v2666_v59 = vld [vmem:[#allocation5 + $0x380] sm:$0xff]  }
  0x8e   :  { %2334 = vmatprep.subr.bf16.mxu1 %v2621_v62  ;;  %v2669_v62 = vld [vmem:[#allocation5 + $0x3c8] sm:$0xff]  }
  0x8f   :  { %2313 = vmatpush3.bf16.msra.mxu0 %v2620_v61  ;;  %v2668_v61 = vld [vmem:[#allocation5 + $0x308] sm:$0xff]  }
  0x90   :  { %2314 = vmatprep.subr.bf16.mxu0 %v2623_v0  ;;  %v2671_v0 = vld [vmem:[#allocation5 + $0x350] sm:$0xff]  }
  0x91   :  { %2335 = vmatpush3.bf16.msra.mxu1 %v2622_v63  ;;  %v2670_v63 = vld [vmem:[#allocation5 + $0x388] sm:$0xff]  }
  0x92   :  { %2336 = vmatprep.subr.bf16.mxu1 %v2625_v2  ;;  %v2673_v2 = vld [vmem:[#allocation5 + $0x3d0] sm:$0xff]  }
  0x93   :  { %2315 = vmatpush3.bf16.msra.mxu0 %v2624_v1  ;;  %v2672_v1 = vld [vmem:[#allocation5 + $0x310] sm:$0xff]  }
  0x94   :  { %2316 = vmatprep.subr.bf16.mxu0 %v2627_v4  ;;  %v2675_v4 = vld [vmem:[#allocation5 + $0x358] sm:$0xff]  }
  0x95   :  { %2337 = vmatpush3.bf16.msra.mxu1 %v2626_v3  ;;  %v2674_v3 = vld [vmem:[#allocation5 + $0x390] sm:$0xff]  }
  0x96   :  { %2338 = vmatprep.subr.bf16.mxu1 %v2629_v6  ;;  %v2677_v6 = vld [vmem:[#allocation5 + $0x3d8] sm:$0xff]  }
  0x97   :  { %2317 = vmatpush3.bf16.msra.mxu0 %v2628_v5  ;;  %v2676_v5 = vld [vmem:[#allocation5 + $0x318] sm:$0xff]  }
  0x98   :  { %2346 = vmatprep.subr.bf16.mxu0 %v2631_v12  ;;  %v2683_v12 = vld [vmem:[#allocation5 + $0x368] sm:$0xff]  }
  0x99   :  { %2339 = vmatpush3.bf16.msra.mxu1 %v2630_v9  ;;  %v2680_v9 = vld [vmem:[#allocation5 + $0x320] sm:$0xff]  }
  0x9a   :  { %1438 = vmatmul.mubr.bf16.vlgmr.msra.gmra.mrb[4].mxu0 %v123_v11  ;;  %2368 = vmatprep.subr.bf16.mxu1 %v2633_v18  ;;  %v2682_v11 = vld [vmem:[#allocation5 + $0x3a0] sm:$0xff]   ;;  %v2689_v18 = vld [vmem:[#allocation5 + $0x3f0] sm:$0xff]  }
  0x9b   :  { %2347 = vmatpush3.bf16.msra.mxu0 %v2632_v15  ;;  %1517 = vmatprep.mubr.bf16.mxu0 %v128_v48  ;;  %v2686_v15 = vld [vmem:[#allocation5 + $0x3a8] sm:$0xff]  }
  0x9c   :  { %1478 = vmatmul.mubr.bf16.vlgmr.msra.gmra.mrb[4].mxu1 %v125_v17  ;;  %2348 = vmatprep.subr.bf16.mxu0 %v2635_v20  ;;  %v2688_v17 = vld [vmem:[#allocation5 + $0x330] sm:$0xff]   ;;  %v2691_v20 = vld [vmem:[#allocation5 + $0x378] sm:$0xff]  }
  0x9d   :  { %2369 = vmatpush3.bf16.msra.mxu1 %v2634_v19  ;;  %1557 = vmatprep.mubr.bf16.mxu1 %v130_v54  ;;  %v2690_v19 = vld [vmem:[#allocation5 + $0x3b0] sm:$0xff]  }
  0x9e   :  { %2370 = vmatprep.subr.bf16.mxu1 %v2637_v22  ;;  %v2693_v22 = vld [vmem:[#allocation5 + $0x3f8] sm:$0xff]  }
  0x9f   :  { %2349 = vmatpush3.bf16.msra.mxu0 %v2636_v21  ;;  %v2692_v21 = vld [vmem:[#allocation5 + $0x338] sm:$0xff]  }
  0xa0   :  { %2350 = vmatprep.subr.bf16.mxu0 %v2639_v24 }
  0xa1   :  { %2371 = vmatpush3.bf16.msra.mxu1 %v2638_v23  ;;  %v113_v23 = vld [vmem:[#allocation2 + $0x68] sm:$0xff] }
  0xa2   :  { %2372 = vmatprep.subr.bf16.mxu1 %v2641_v26  ;;  %v132_v24 = vpack.c.bf16 %v113_v23, %v113_v23  ;;  %v112_v26 = vld [vmem:[#allocation2 + $0x60] sm:$0xff] }
  0xa3   :  { %2351 = vmatpush3.bf16.msra.mxu0 %v2640_v25  ;;  %v2694_v25 = vld [vmem:[#allocation5 + $0x3b8] sm:$0xff]  }
  0xa4   :  { %2352 = vmatprep.subr.bf16.mxu0 %v2643_v28  ;;  %v2695_v28 = vld [vmem:[#allocation5 + $0x440] sm:$0xff]  }
  0xa5   :  { %2373 = vmatpush3.bf16.msra.mxu1 %v2642_v27  ;;  %v131_v27 = vpack.c.bf16 %v112_v26, %v112_v26 }
  0xa6   :  { %2374 = vmatprep.subr.bf16.mxu1 %v2645_v30 }
  0xa7   :  { %2353 = vmatpush3.bf16.msra.mxu0 %v2644_v29  ;;  %v115_v29 = vld [vmem:[#allocation2 + $0x78] sm:$0xff] }
  0xa8   :  { %2354 = vmatprep.subr.bf16.mxu0 %v2647_v32  ;;  %v134_v30 = vpack.c.bf16 %v115_v29, %v115_v29  ;;  %v114_v32 = vld [vmem:[#allocation2 + $0x70] sm:$0xff] }
  0xa9   :  { %2375 = vmatpush3.bf16.msra.mxu1 %v2646_v31  ;;  %v2696_v31 = vld [vmem:[#allocation5 + $0x400] sm:$0xff]  }
  0xaa   :  { %2376 = vmatprep.subr.bf16.mxu1 %v2649_v34  ;;  %v2697_v34 = vld [vmem:[#allocation5 + $0x448] sm:$0xff]  }
  0xab   :  { %2355 = vmatpush3.bf16.msra.mxu0 %v2648_v33  ;;  %v133_v33 = vpack.c.bf16 %v114_v32, %v114_v32 }
  0xac   :  { %2356 = vmatprep.subr.bf16.mxu0 %v2651_v36  ;;  %v2885_v36 = vmov 0.0  }
  0xad   :  { %2377 = vmatpush3.bf16.msra.mxu1 %v2650_v35  ;;  %v2698_v35 = vld [vmem:[#allocation5 + $0x408] sm:$0xff]  }
  0xae   :  { %2378 = vmatprep.subr.bf16.mxu1 %v2653_v38  ;;  %v2700_v38 = vld [vmem:[#allocation5 + $0x410] sm:$0xff]  }
  0xaf   :  { %2357 = vmatpush3.bf16.msra.mxu0 %v2652_v37  ;;  %v2699_v37 = vld [vmem:[#allocation5 + $0x450] sm:$0xff]  }
  0xb0   :  { %2358 = vmatprep.subr.bf16.mxu0 %v2655_v40  ;;  %v2702_v40 = vld [vmem:[#allocation5 + $0x418] sm:$0xff]  }
  0xb1   :  { %2379 = vmatpush3.bf16.msra.mxu1 %v2654_v39  ;;  %v2701_v39 = vld [vmem:[#allocation5 + $0x458] sm:$0xff]  }
  0xb2   :  { %2380 = vmatprep.subr.bf16.mxu1 %v2657_v42  ;;  %v2707_v42 = vld [vmem:[#allocation5 + $0x480] sm:$0xff]  }
  0xb3   :  { %2359 = vmatpush3.bf16.msra.mxu0 %v2656_v41  ;;  %v2703_v41 = vld [vmem:[#allocation5 + $0x460] sm:$0xff]  }
  0xb4   :  { %2360 = vmatprep.subr.bf16.mxu0 %v2659_v44  ;;  %v2705_v44 = vld [vmem:[#allocation5 + $0x468] sm:$0xff]  }
  0xb5   :  { %2381 = vmatpush3.bf16.msra.mxu1 %v2658_v43  ;;  %v2704_v43 = vld [vmem:[#allocation5 + $0x420] sm:$0xff]  }
  0xb6   :  { %2382 = vmatprep.subr.bf16.mxu1 %v2661_v46  ;;  %v117_v46 = vld [vmem:[#allocation2 + $0x88] sm:$0xff] }
  0xb7   :  { %2361 = vmatpush3.bf16.msra.mxu0 %v2660_v45  ;;  %v2710_v45 = vld [vmem:[#allocation5 + $0x488] sm:$0xff]   ;;  %v136_v48 = vpack.c.bf16 %v117_v46, %v117_v46 }
  0xb8   :  { %2390 = vmatprep.subr.bf16.mxu0 %v2663_v52  ;;  %v2709_v52 = vld [vmem:[#allocation5 + $0x430] sm:$0xff]  }
  0xb9   :  { %2383 = vmatpush3.bf16.msra.mxu1 %v2662_v49  ;;  %v2713_v49 = vld [vmem:[#allocation5 + $0x490] sm:$0xff]  }
  0xba   :  { %1518 = vmatmul.mubr.bf16.vlgmr.msra.gmra.mrb[8].mxu0 %v127_v51  ;;  %2412 = vmatprep.subr.bf16.mxu1 %v2665_v58  ;;  %v118_v51 = vld [vmem:[#allocation2 + $0x90] sm:$0xff] }
  0xbb   :  { %2391 = vmatpush3.bf16.msra.mxu0 %v2664_v55  ;;  %1597 = vmatprep.mubr.bf16.mxu0 %v132_v24  ;;  %v137_v54 = vpack.c.bf16 %v118_v51, %v118_v51  ;;  %v2712_v55 = vld [vmem:[#allocation5 + $0x438] sm:$0xff]  }
  0xbc   :  { %1558 = vmatmul.mubr.bf16.vlgmr.msra.gmra.mrb[8].mxu1 %v129_v57  ;;  %2392 = vmatprep.subr.bf16.mxu0 %v2667_v60  ;;  %v135_v57 = vpack.c.bf16 %v116_v56, %v116_v56  ;;  %v2714_v58 = vld [vmem:[#allocation7] sm:$0xff]   ;;  %v2716_v60 = vld [vmem:[#allocation7 + $0x10] sm:$0xff]  }
  0xbd   :  { %2413 = vmatpush3.bf16.msra.mxu1 %v2666_v59  ;;  %1637 = vmatprep.mubr.bf16.mxu1 %v134_v30  ;;  %v2715_v59 = vld [vmem:[#allocation7 + $0x8] sm:$0xff]  }
  0xbe   :  { %2414 = vmatprep.subr.bf16.mxu1 %v2669_v62  ;;  %v2718_v62 = vld [vmem:[#allocation7 + $0x20] sm:$0xff]  }
  0xbf   :  { %2393 = vmatpush3.bf16.msra.mxu0 %v2668_v61  ;;  %v2717_v61 = vld [vmem:[#allocation7 + $0x18] sm:$0xff]  }
  0xc0   :  { %2394 = vmatprep.subr.bf16.mxu0 %v2671_v0  ;;  %v2082_v0 = vld [vmem:[%s3071_s2] ss:$0 sm:$0xff] }
  0xc1   :  { %2415 = vmatpush3.bf16.msra.mxu1 %v2670_v63 }
  0xc2   :  { %2416 = vmatprep.subr.bf16.mxu1 %v2673_v2 }
  0xc3   :  { %2395 = vmatpush3.bf16.msra.mxu0 %v2672_v1 }
  0xc4   :  { %2396 = vmatprep.subr.bf16.mxu0 %v2675_v4 }
  0xc5   :  { %2417 = vmatpush3.bf16.msra.mxu1 %v2674_v3 }
  0xc6   :  { %2418 = vmatprep.subr.bf16.mxu1 %v2677_v6 }
  0xc7   :  { %2397 = vmatpush3.bf16.msra.mxu0 %v2676_v5 }
  0xc8   :  { %2398 = vmatprep.subr.bf16.mxu0 %v2679_v8  ;;  %v2719_v8 = vld [vmem:[#allocation7 + $0x28] sm:$0xff]  }
  0xc9   :  { %2419 = vmatpush3.bf16.msra.mxu1 %v2678_v7 }
  0xca   :  { %2420 = vmatprep.subr.bf16.mxu1 %v2681_v10 }
  0xcb   :  { %2399 = vmatpush3.bf16.msra.mxu0 %v2680_v9 }
  0xcc   :  { %2400 = vmatprep.subr.bf16.mxu0 %v2683_v12 }
  0xcd   :  { %2421 = vmatpush3.bf16.msra.mxu1 %v2682_v11 }
  0xce   :  { %2422 = vmatprep.subr.bf16.mxu1 %v2685_v14  ;;  %v2721_v14 = vld [vmem:[#allocation7 + $0x38] sm:$0xff]  }
  0xcf   :  { %2401 = vmatpush3.bf16.msra.mxu0 %v2684_v13  ;;  %v2720_v13 = vld [vmem:[#allocation7 + $0x30] sm:$0xff]  }
  0xd0   :  { %2402 = vmatprep.subr.bf16.mxu0 %v2687_v16  ;;  %v2723_v16 = vld [vmem:[#allocation8 + $0x8] sm:$0xff]  }
  0xd1   :  { %2423 = vmatpush3.bf16.msra.mxu1 %v2686_v15  ;;  %v2722_v15 = vld [vmem:[#allocation8] sm:$0xff]  }
  0xd2   :  { %2424 = vmatprep.subr.bf16.mxu1 %v2689_v18  ;;  %v2725_v18 = vld [vmem:[#allocation8 + $0x18] sm:$0xff]  }
  0xd3   :  { %2403 = vmatpush3.bf16.msra.mxu0 %v2688_v17  ;;  %v2724_v17 = vld [vmem:[#allocation8 + $0x10] sm:$0xff]  }
  0xd4   :  { %2404 = vmatprep.subr.bf16.mxu0 %v2691_v20 }
  0xd5   :  { %2425 = vmatpush3.bf16.msra.mxu1 %v2690_v19  ;;  %v2726_v19 = vld [vmem:[#allocation8 + $0x20] sm:$0xff]  }
  0xd6   :  { %2426 = vmatprep.subr.bf16.mxu1 %v2693_v22  ;;  %v2727_v22 = vld [vmem:[#allocation8 + $0x28] sm:$0xff]  }
  0xd7   :  { %2405 = vmatpush3.bf16.msra.mxu0 %v2692_v21 }
  0xd8   :  { %2434 = vmatprep.subr.bf16.mxu0 %v2695_v28 }
  0xd9   :  { %2427 = vmatpush3.bf16.msra.mxu1 %v2694_v25 }
  0xda   :  { %1598 = vmatmul.mubr.bf16.vlgmr.msra.gmra.mrb[12].mxu0 %v131_v27  ;;  %2487 = vmatprep.subr.bf16.mxu1 %v2885_v36 }
  0xdb   :  { %2435 = vmatpush3.bf16.msra.mxu0 %v2696_v31  ;;  %1677 = vmatprep.mubr.bf16.mxu0 %v136_v48 }
  0xdc   :  { %1638 = vmatmul.mubr.bf16.vlgmr.msra.gmra.mrb[12].mxu1 %v133_v33  ;;  %2436 = vmatprep.subr.bf16.mxu0 %v2697_v34 }
  0xdd   :  { %2493 = vmatprep.mubr.msk.bf16.mxu1 %vm2886_vm0, %v2885_v36  ;;  %2488 = vmatpush3.bf16.msra.mxu1 %v2707_v42 }
  0xde   :  { %2489 = vmatprep.subr.bf16.mxu1 %v2885_v36 }
  0xdf   :  { %2437 = vmatpush3.bf16.msra.mxu0 %v2698_v35 }
  0xe0   :  { %2438 = vmatprep.subr.bf16.mxu0 %v2699_v37 }
  0xe1   :  { %2490 = vmatpush3.bf16.msra.mxu1 %v2710_v45 }
  0xe2   :  { %2491 = vmatprep.subr.bf16.mxu1 %v2885_v36 }
  0xe3   :  { %2439 = vmatpush3.bf16.msra.mxu0 %v2700_v38 }
  0xe4   :  { %2440 = vmatprep.subr.bf16.mxu0 %v2701_v39 }
  0xe5   :  { %2492 = vmatpush3.bf16.msra.mxu1 %v2713_v49 }
  0xe6   :  { %2497 = vmatprep.subr.bf16.mxu1 %v2885_v36 }
  0xe7   :  { %2441 = vmatpush3.bf16.msra.mxu0 %v2702_v40 }
  0xe8   :  { %2442 = vmatprep.subr.bf16.mxu0 %v2703_v41  ;;  %2494 = vmatmul.mubr.msk.bf16.vlgmr.msra.gmra.mrb[16].mxu1 %vm1321_vm1, %v137_v54 }
  0xe9   :  { %2513 = vmatprep.mubr.msk.bf16.mxu1 %vm2886_vm0, %v2885_v36  ;;  %2498 = vmatpush3.bf16.msra.mxu1 %v2714_v58 }
  0xea   :  { %2499 = vmatprep.subr.bf16.mxu1 %v2885_v36 }
  0xeb   :  { %2443 = vmatpush3.bf16.msra.mxu0 %v2704_v43 }
  0xec   :  { %2444 = vmatprep.subr.bf16.mxu0 %v2705_v44 }
  0xed   :  { %2500 = vmatpush3.bf16.msra.mxu1 %v2715_v59 }
  0xee   :  { %2501 = vmatprep.subr.bf16.mxu1 %v2885_v36 }
  0xef   :  { %2445 = vmatpush3.bf16.msra.mxu0 %v2706_v47 }
  0xf0   :  { %2446 = vmatprep.subr.bf16.mxu0 %v2708_v50 }
  0xf1   :  { %2502 = vmatpush3.bf16.msra.mxu1 %v2716_v60 }
  0xf2   :  { %2503 = vmatprep.subr.bf16.mxu1 %v2885_v36 }
  0xf3   :  { %2447 = vmatpush3.bf16.msra.mxu0 %v2709_v52 }
  0xf4   :  { %2448 = vmatprep.subr.bf16.mxu0 %v2711_v53 }
  0xf5   :  { %2504 = vmatpush3.bf16.msra.mxu1 %v2717_v61 }
  0xf6   :  { %2505 = vmatprep.subr.bf16.mxu1 %v2885_v36 }
  0xf7   :  { %2449 = vmatpush3.bf16.msra.mxu0 %v2712_v55 }
  0xf8   :  { %2517 = vmatprep.subr.bf16.mxu0 %v2885_v36 }
  0xf9   :  { %2506 = vmatpush3.bf16.msra.mxu1 %v2718_v62 }
  0xfa   :  { %1678 = vmatmul.mubr.bf16.vlgmr.msra.gmra.mrb[16].mxu0 %v135_v57  ;;  %2507 = vmatprep.subr.bf16.mxu1 %v2885_v36 }
  0xfb   :  { %2533 = vmatprep.mubr.msk.bf16.mxu0 %vm2886_vm0, %v2885_v36  ;;  %2518 = vmatpush3.bf16.msra.mxu0 %v2722_v15  ;;  %v2231_v15 = vld [vmem:[%s3073_s4] ss:$0 sm:$0xff] }
  0xfc   :  { %2519 = vmatprep.subr.bf16.mxu0 %v2885_v36 }
  0xfd   :  { %2508 = vmatpush3.bf16.msra.mxu1 %v2719_v8  ;;  %v2729_v8 = vld [vmem:[#allocation8 + $0x38] sm:$0xff]  }
  0xfe   :  { %2509 = vmatprep.subr.bf16.mxu1 %v2885_v36 }
  0xff   :  { %2520 = vmatpush3.bf16.msra.mxu0 %v2723_v16 }
 0x100   :  { %2521 = vmatprep.subr.bf16.mxu0 %v2885_v36 }
 0x101   :  { %2510 = vmatpush3.bf16.msra.mxu1 %v2720_v13  ;;  %v2734_v13 = vld [vmem:[#allocation10 + $0x20] sm:$0xff]  }
 0x102   :  { %2511 = vmatprep.subr.bf16.mxu1 %v2885_v36 }
 0x103   :  { %2522 = vmatpush3.bf16.msra.mxu0 %v2724_v17 }
 0x104   :  { %2523 = vmatprep.subr.bf16.mxu0 %v2885_v36 }
 0x105   :  { %2512 = vmatpush3.bf16.msra.mxu1 %v2721_v14  ;;  %v2735_v14 = vld [vmem:[#allocation10 + $0x28] sm:$0xff]  }
 0x106   :  { %2537 = vmatprep.subr.bf16.mxu1 %v2885_v36 }
 0x107   :  { %2524 = vmatpush3.bf16.msra.mxu0 %v2725_v18 }
 0x108   :  { %2525 = vmatprep.subr.bf16.mxu0 %v2885_v36 }
 0x10b   :  { %2526 = vmatpush3.bf16.msra.mxu0 %v2726_v19 }
 0x10c   :  { %2527 = vmatprep.subr.bf16.mxu0 %v2885_v36 }
 0x10f   :  { %2528 = vmatpush3.bf16.msra.mxu0 %v2727_v22 }
 0x110   :  { %2529 = vmatprep.subr.bf16.mxu0 %v2885_v36 }
 0x14d   :  { %v2274_v63 = vpop.f32.mrb[0].mxu0 }
 0x14e   :  { %v2275_v1 = vpop.f32.mrb[1].mxu0 }
 0x14f   :  { %v2276_v2 = vadd.f32 %v2275_v1, %v2274_v63  ;;  %v2277_v3 = vpop.f32.mrb[2].mxu0  ;;  %v2296_v4 = vpop.f32.mrb[0].mxu1 }
 0x150   :  { %v2278_v5 = vpop.f32.mrb[3].mxu0  ;;  %v2297_v7 = vpop.f32.mrb[1].mxu1 }
 0x151   :  { %v1360_v6 = vadd.f32 %v2276_v2, %v2082_v0  ;;  %v2298_v9 = vadd.f32 %v2297_v7, %v2296_v4  ;;  %v2299_v10 = vpop.f32.mrb[2].mxu1  ;;  %v2728_v7 = vld [vmem:[#allocation8 + $0x30] sm:$0xff]  }
 0x152   :  { %v2300_v11 = vpop.f32.mrb[3].mxu1  ;;  %2530 = vmatpush3.bf16.msra.mxu0 %v2728_v7  ;;  %v2731_v10 = vld [vmem:[#allocation10 + $0x8] sm:$0xff]  }
 0x153   :  { %v1400_v12 = vadd.f32 %v2298_v9, %v1360_v6  ;;  %2531 = vmatprep.subr.bf16.mxu0 %v2885_v36  ;;  %v2730_v9 = vld [vmem:[#allocation10] sm:$0xff]   ;;  %v2732_v11 = vld [vmem:[#allocation10 + $0x10] sm:$0xff]  }
 0x156   :  { %2532 = vmatpush3.bf16.msra.mxu0 %v2729_v8 }
 0x16d   :  { %v2318_v20 = vpop.f32.mrb[4].mxu0 }
 0x16e   :  { %v2319_v21 = vpop.f32.mrb[5].mxu0 }
 0x16f   :  { %v2320_v23 = vadd.f32 %v2319_v21, %v2318_v20  ;;  %v2321_v24 = vpop.f32.mrb[6].mxu0  ;;  %v2340_v25 = vpop.f32.mrb[4].mxu1 }
 0x170   :  { %v2322_v26 = vpop.f32.mrb[7].mxu0  ;;  %v2341_v28 = vpop.f32.mrb[5].mxu1  ;;  %v2737_v24 = vld [vmem:[#allocation10 + $0x38] sm:$0xff]  }
 0x171   :  { %v1440_v27 = vadd.f32 %v2320_v23, %v1400_v12  ;;  %v2342_v29 = vadd.f32 %v2341_v28, %v2340_v25  ;;  %v2343_v30 = vpop.f32.mrb[6].mxu1  ;;  %v2733_v12 = vld [vmem:[#allocation10 + $0x18] sm:$0xff]   ;;  %v2736_v23 = vld [vmem:[#allocation10 + $0x30] sm:$0xff]  }
 0x172   :  { %v2344_v31 = vpop.f32.mrb[7].mxu1  ;;  %v2240_v25 = vld [vmem:[%s3075_s6] ss:$0 sm:$0xff]  ;;  %s2848_s6 = scalar_lea.vmem %s2072_s12, 128 }
 0x173   :  { %v1480_v32 = vadd.f32 %v2342_v29, %v1440_v27  ;;  %p2849_p12 = scmp.ne.s32.totalorder %s2072_s12, %s2848_s6  ;;  %p2854_p0 = scmp.lt.s32.totalorder %s2848_s6, %s2848_s6 }
 0x175   :  { %p2855_p1 = por %p2854_p0, %p2853_p13 }
 0x177   :  { %p2856_p2 = pnand %p2855_p1, %p2849_p12 }
 0x18d   :  { %v2362_v33 = vpop.f32.mrb[8].mxu0 }
 0x18e   :  { %v2363_v34 = vpop.f32.mrb[9].mxu0 }
 0x18f   :  { %v2364_v35 = vadd.f32 %v2363_v34, %v2362_v33  ;;  %v2365_v37 = vpop.f32.mrb[10].mxu0  ;;  %v2384_v38 = vpop.f32.mrb[8].mxu1  ;;  %v2249_v33 = vld [vmem:[%s3077_s8] ss:$0 sm:$0xff] }
 0x190   :  { %v2366_v39 = vpop.f32.mrb[11].mxu0  ;;  %v2385_v40 = vpop.f32.mrb[9].mxu1 }
 0x191   :  { %v1520_v41 = vadd.f32 %v2364_v35, %v1480_v32  ;;  %v2386_v42 = vadd.f32 %v2385_v40, %v2384_v38  ;;  %v2387_v43 = vpop.f32.mrb[10].mxu1 }
 0x192   :  { %v2388_v44 = vpop.f32.mrb[11].mxu1 }
 0x193   :  { %v1560_v45 = vadd.f32 %v2386_v42, %v1520_v41 }
 0x1ad   :  { %v2406_v46 = vpop.f32.mrb[12].mxu0 }
 0x1ae   :  { %v2407_v47 = vpop.f32.mrb[13].mxu0 }
 0x1af   :  { %v2408_v48 = vadd.f32 %v2407_v47, %v2406_v46  ;;  %v2409_v49 = vpop.f32.mrb[14].mxu0  ;;  %v2428_v50 = vpop.f32.mrb[12].mxu1 }
 0x1b0   :  { %v2410_v51 = vpop.f32.mrb[15].mxu0  ;;  %v2429_v53 = vpop.f32.mrb[13].mxu1 }
 0x1b1   :  { %v1600_v52 = vadd.f32 %v2408_v48, %v1560_v45  ;;  %v2430_v54 = vadd.f32 %v2429_v53, %v2428_v50  ;;  %v2431_v55 = vpop.f32.mrb[14].mxu1 }
 0x1b2   :  { %v2432_v56 = vpop.f32.mrb[15].mxu1 }
 0x1b3   :  { %v1640_v57 = vadd.f32 %v2430_v54, %v1600_v52 }
 0x1bb   :  { %v1719_v58 = vpop.f32.mrb[16].mxu1 }
 0x1bc   :  { %v2495_v59 = vpop.f32.mrb[17].mxu1 }
 0x1bd   :  { %v1722_v60 = vpop.f32.mrb[18].mxu1 }
 0x1be   :  { %v2496_v61 = vpop.f32.mrb[19].mxu1 }
 0x1cd   :  { %v2450_v62 = vpop.f32.mrb[16].mxu0 }
 0x1ce   :  { %v2451_v63 = vpop.f32.mrb[17].mxu0 }
 0x1cf   :  { %v2452_v0 = vadd.f32 %v2451_v63, %v2450_v62  ;;  %v2453_v1 = vpop.f32.mrb[18].mxu0 }
 0x1d0   :  { %v2454_v2 = vpop.f32.mrb[19].mxu0 }
 0x1d1   :  { %v1680_v3 = vadd.f32 %v2452_v0, %v1640_v57 }
 0x1d3   :  { %v1720_v4 = vadd.f32 %v1719_v58, %v1680_v3 }
 0x1d5   :  { %v1725_v5 = vmax.f32 %v1720_v4, 0.0 }
 0x1d7   :  { %v1726_v6 = vpack.c.bf16 %v1725_v5, %v1725_v5 }
 0x1d9   :  { %2514 = vmatmul.mubr.bf16.vlgmr.msra.gmra.mrb[20].mxu1 %v1726_v6 }
 0x1da   :  { %2553 = vmatprep.mubr.msk.bf16.mxu1 %vm2886_vm0, %v2885_v36  ;;  %2538 = vmatpush3.bf16.msra.mxu1 %v2730_v9 }
 0x1db   :  { %2539 = vmatprep.subr.bf16.mxu1 %v2885_v36 }
 0x1de   :  { %2540 = vmatpush3.bf16.msra.mxu1 %v2731_v10 }
 0x1df   :  { %2541 = vmatprep.subr.bf16.mxu1 %v2885_v36 }
 0x1e2   :  { %2542 = vmatpush3.bf16.msra.mxu1 %v2732_v11 }
 0x1e3   :  { %2543 = vmatprep.subr.bf16.mxu1 %v2885_v36 }
 0x1e6   :  { %2544 = vmatpush3.bf16.msra.mxu1 %v2733_v12 }
 0x1e7   :  { %2545 = vmatprep.subr.bf16.mxu1 %v2885_v36 }
 0x1ea   :  { %2546 = vmatpush3.bf16.msra.mxu1 %v2734_v13 }
 0x1eb   :  { %2547 = vmatprep.subr.bf16.mxu1 %v2885_v36 }
 0x1ee   :  { %2548 = vmatpush3.bf16.msra.mxu1 %v2735_v14 }
 0x1ef   :  { %2549 = vmatprep.subr.bf16.mxu1 %v2885_v36 }
 0x1f2   :  { %2550 = vmatpush3.bf16.msra.mxu1 %v2736_v23 }
 0x1f3   :  { %2551 = vmatprep.subr.bf16.mxu1 %v2885_v36 }
 0x1f6   :  { %2552 = vmatpush3.bf16.msra.mxu1 %v2737_v24 }
 0x2ac   :  { %v1832_v16 = vpop.f32.mrb[20].mxu1 }
 0x2ad   :  { %v1833_v17 = vadd.f32 %v2231_v15, %v1832_v16  ;;  %v2515_v18 = vpop.f32.mrb[21].mxu1 }
 0x2ae   :  { %v1835_v19 = vpop.f32.mrb[22].mxu1 }
 0x2af   :  { %v1838_v20 = vmax.f32 %v1833_v17, 0.0  ;;  %v2516_v21 = vpop.f32.mrb[23].mxu1 }
 0x2b1   :  { %v1839_v22 = vpack.c.bf16 %v1838_v20, %v1838_v20 }
 0x2b3   :  { %2534 = vmatmul.mubr.bf16.vlgmr.msra.gmra.mrb[20].mxu0 %v1839_v22 }
 0x386   :  { %v1945_v26 = vpop.f32.mrb[20].mxu0 }
 0x387   :  { %v1946_v27 = vadd.f32 %v2240_v25, %v1945_v26  ;;  %v2535_v28 = vpop.f32.mrb[21].mxu0 }
 0x388   :  { %v1948_v29 = vpop.f32.mrb[22].mxu0 }
 0x389   :  { %v1951_v30 = vmax.f32 %v1946_v27, 0.0  ;;  %v2536_v31 = vpop.f32.mrb[23].mxu0 }
 0x38b   :  { %v1952_v32 = vpack.c.bf16 %v1951_v30, %v1951_v30 }
 0x38d   :  { %2554 = vmatmul.mubr.bf16.vlgmr.msra.gmra.mrb[24].mxu1 %v1952_v32 }
 0x460   :  { %v2058_v36 = vpop.f32.mrb[24].mxu1 }
 0x461   :  { %v2059_v34 = vadd.f32 %v2249_v33, %v2058_v36  ;;  %v2555_v35 = vpop.f32.mrb[25].mxu1 }
 0x462   :  { %v2061_v37 = vpop.f32.mrb[26].mxu1 }
 0x463   :  { %2064 = vst [vmem:[#allocation11] sm:$0xff] %v2059_v34  ;;  %v2556_v38 = vpop.f32.mrb[27].mxu1 }
 0x464   :  { %2859 = shalt.err (!%p2856_p2)
}
 0x465   :  { %s2860_s8 = scalar_lea.hbm %s3078_s9, 128 }
 0x466   :  { %p2861_p3 = scmp.ne.s32.totalorder %s3078_s9, %s2860_s8  ;;  %p2864_p4 = scmp.lt.u32.totalorder %s2860_s8, %s3078_s9 }
 0x468   :  { %p2866_p5 = pnand %p2864_p4, %p2861_p3 }
 0x46a   :  { %2869 = shalt.err (!%p2866_p5)
}
 0x46b   :  { %2074 = dma.vmem_to_hbm [thread:$0]  %s2072_s12, 128, %s3078_s9, [#allocation4]  }
 0x46c   :  { %2876 = dma.done.wait [#allocation4], 128  }
 0x46d   :  { %2877 = vsyncadd [#allocation4], 4294967168 }
 0x46e   :  { %2078 = vsyncpa [#allocation3], 1 }
 0x46f   :  { %2079 = vsyncpa [#allocation6], 1 }
 0x470   :  { %2080 = vsyncpa [#allocation9], 1 }
 0x471   :  { %2081 = vsyncpa [#allocation4], 1 }

</bundles_post_ra>
